<compile_context>
chip_gen: v6e
topology: v6e:2x2x1
jax: 0.10.0
libtpu: 0.0.40
codegen_flags: <defaults>
</compile_context>

<pallas_src>
import jax
import jax.numpy as jnp
from jax.experimental import pallas as pl
from jax.experimental.pallas import tpu as pltpu


# ---------------------------------------------------------------------------
# Kernel: elementwise activation (ReLU) on a lane-dense VMEM tile.
# ---------------------------------------------------------------------------
def _relu_kernel(x_ref, o_ref):
    zero = jnp.zeros((), dtype=x_ref.dtype)
    o_ref[...] = jnp.maximum(x_ref[...], zero)


def _round_up(v, m):
    return -(-v // m) * m


def _relu_pallas(x, *, lane_w=1024, target_tile_bytes=2 << 20):
    """ReLU over an arbitrarily-shaped array via a tiled, lane-dense Pallas kernel."""
    orig_shape = x.shape
    dtype = x.dtype
    itemsize = dtype.itemsize
    n = x.size

    # Sublane packing: 8 rows for 4-byte, 16 for 2-byte, 32 for 1-byte dtypes.
    row_align = max(8, 32 // itemsize)

    # Flatten to a (rows, lane_w) slab with a lane-dense (multiple-of-128) last dim.
    rows = -(-n // lane_w)

    # Tile rows so one tile is ~target_tile_bytes (1-4 MiB: hides the ~0.35us
    # per-step grid overhead while fitting every TPU generation's scoped VMEM
    # with double-buffered input + output).
    max_tr = max(
        row_align,
        (target_tile_bytes // (lane_w * itemsize)) // row_align * row_align,
    )
    tr = min(max_tr, _round_up(rows, row_align))
    rows_padded = _round_up(rows, tr)
    total_padded = rows_padded * lane_w

    flat = x.reshape(-1)
    if total_padded != n:
        flat = jnp.pad(flat, (0, total_padded - n))
    x2d = flat.reshape(rows_padded, lane_w)

    tile_bytes = tr * lane_w * itemsize
    # in + out, double-buffered, plus headroom for internal scratch.
    vmem_limit_bytes = int(max(4 * tile_bytes + (2 << 20), 8 << 20))

    out2d = pl.pallas_call(
        _relu_kernel,
        out_shape=jax.ShapeDtypeStruct(x2d.shape, dtype),
        grid=(rows_padded // tr,),
        in_specs=[pl.BlockSpec((tr, lane_w), lambda i: (i, 0))],
        out_specs=pl.BlockSpec((tr, lane_w), lambda i: (i, 0)),
        input_output_aliases={0: 0},  # write activation in place on the padded slab
        compiler_params=pltpu.CompilerParams(
            dimension_semantics=("parallel",),
            vmem_limit_bytes=vmem_limit_bytes,
        ),
    )(x2d)

    return out2d.reshape(-1)[:n].reshape(orig_shape)


def double_activation(x, mask, *, use_pallas=None):
    """forward((x, mask)) -> (activation(x), mask). Activation = ReLU."""
    if use_pallas is None:
        # Small-input fast path: below ~1 MiB the fixed pallas_call overhead
        # dwarfs the HBM round trip; plain XLA handles it (and would ideally be
        # fused into the producing partial-conv op).
        use_pallas = x.size * x.dtype.itemsize >= (1 << 20)
    if not use_pallas:
        return jnp.maximum(x, jnp.zeros((), x.dtype)), mask
    # mask is returned unchanged — identity pass-through, no kernel needed.
    return _relu_pallas(x), mask


if __name__ == "__main__":
    key = jax.random.PRNGKey(0)
    kx, km = jax.random.split(key)

    # Small NCHW shapes consistent with the module's usage in partial conv.
    x = jax.random.normal(kx, (2, 4, 16, 16), dtype=jnp.float32)
    mask = (jax.random.uniform(km, (2, 4, 16, 16)) > 0.5).astype(jnp.float32)

    # Force the Pallas path for the demo shape (the auto heuristic would take
    # the small-input fast path here).
    out, mask_out = double_activation(x, mask, use_pallas=True)
    jax.block_until_ready(out)
    jax.block_until_ready(mask_out)

    ref = jnp.maximum(x, 0.0)
    assert jnp.allclose(out, ref), "activation output mismatch"
    assert jnp.array_equal(mask_out, mask), "mask must pass through unchanged"

    # Exercise lane padding + a multi-step grid (small tile budget on purpose):
    # flattened size is not a multiple of 1024 and spans 4 grid tiles.
    x2 = jax.random.normal(kx, (3, 5, 60, 60), dtype=jnp.float32)
    out2 = _relu_pallas(x2, lane_w=1024, target_tile_bytes=64 * 1024)
    jax.block_until_ready(out2)
    assert jnp.allclose(out2, jnp.maximum(x2, 0.0)), "tiled/padded path mismatch"

    # Auto path (pure-JAX fast path for this tiny input) must agree too.
    out3, mask3 = double_activation(x, mask)
    assert jnp.allclose(out3, ref)
    assert jnp.array_equal(mask3, mask)

    print("KERNEL_OK")
</pallas_src>

<mosaic_0001>
module attributes {stable_mosaic.version = 11 : i64} {
  func.func @_relu_kernel(%arg0: i32, %arg1: memref<8x1024xf32, #tpu.memory_space<vmem>>, %arg2: memref<8x1024xf32, #tpu.memory_space<vmem>>) attributes {dimension_semantics = [#tpu.dimension_semantics<parallel>], iteration_bounds = array<i64: 1>, scalar_prefetch = 0 : i64, scratch_operands = 0 : i64, tpu.core_type = #tpu.core_type<tc>, window_params = [{transform_indices = @transform_0, window_bounds = array<i64: 8, 1024>}, {transform_indices = @transform_1, window_bounds = array<i64: 8, 1024>}]} {
    %c0 = arith.constant 0 : index
    %c0_0 = arith.constant 0 : index
    %0 = vector.load %arg1[%c0, %c0_0] : memref<8x1024xf32, #tpu.memory_space<vmem>>, vector<8x1024xf32>
    %cst = arith.constant 0.000000e+00 : f32
    %1 = vector.broadcast %cst : f32 to vector<8x1024xf32>
    %2 = arith.maximumf %0, %1 : vector<8x1024xf32>
    %c0_1 = arith.constant 0 : index
    %c0_2 = arith.constant 0 : index
    %3 = vector.load %arg2[%c0_1, %c0_2] : memref<8x1024xf32, #tpu.memory_space<vmem>>, vector<8x1024xf32>
    tpu.vector_store %arg2[%c0_1, %c0_2], %2 {strides = array<i32>} : memref<8x1024xf32, #tpu.memory_space<vmem>>, vector<8x1024xf32>,
    return
  }
  func.func @transform_0(%arg0: i32) -> (i32, i32) {
    %c0_i32 = arith.constant 0 : i32
    %c0_i32_0 = arith.constant 0 : i32
    return %arg0, %c0_i32 : i32, i32
  }
  func.func @transform_1(%arg0: i32) -> (i32, i32) {
    %c0_i32 = arith.constant 0 : i32
    %c0_i32_0 = arith.constant 0 : i32
    return %arg0, %c0_i32 : i32, i32
  }
}

</mosaic_0001>

<bundles_post_ra>
// kernel: tpu_custom_call.1
= control target key start
LH: loop header
LB: loop body
LE: loop exit
PB: predicated region body
PF: predicated region fallthrough
CT: control target
= control target key end

     0   :  { %6 = vsyncpa [#allocation3], 0  ;;  %s124_s0 = inlined_call_operand.hbm [shape: f32[8,1024], index: 0, kind: input, shape index: {}, may-alias: {0,1}]   ;;  %s125_s1 = inlined_call_operand.hbm [shape: f32[8,1024], index: 1, kind: output, shape index: {}, may-alias: {0,1}]  }
   0x1   :  { %7 = vsyncpa [#allocation4], 0  ;;  %s106_s6 = smov [#allocation2]  }
   0x2   :  { %s14_s7 = sshll.u32 %s106_s6, 4  ;;  %s15_s7 = int_to_ptr.vmem [resolvable:$true] %s14_s7 }
   0x3   :  { %s70_s8 = scalar_lea.vmem %s15_s7, 1024  ;;  %p75_p1 = scmp.lt.s32.totalorder %s15_s7, %s15_s7 }
   0x4   :  { %p71_p0 = scmp.ne.s32.totalorder %s15_s7, %s70_s8  ;;  %p76_p2 = scmp.lt.s32.totalorder %s70_s8, %s70_s8 }
   0x6   :  { %p77_p3 = por %p76_p2, %p75_p1 }
   0x8   :  { %p78_p4 = pnand %p77_p3, %p71_p0 }
   0xa   :  { %81 = shalt.err (!%p78_p4)
}
   0xb   :  { %17 = dma.hbm_to_vmem [thread:$0]  %s124_s0, 1024, %s15_s7, [#allocation3]  }
   0xc   :  { %102 = dma.done.wait [#allocation3], 1024  }
   0xd   :  { %103 = vsyncadd [#allocation3], 4294966272  ;;  %v21_v0 = vld [vmem:[#allocation2] sm:$0xff]  ;;  %v22_v1 = vld [vmem:[#allocation2 + $0x8] sm:$0xff]  ;;  %s107_s11 = smov [#allocation5]  }
   0xe   :  { %v23_v2 = vld [vmem:[#allocation2 + $0x10] sm:$0xff]  ;;  %s51_s12 = sshll.u32 %s107_s11, 4  ;;  %v29_v3 = vmax.f32 %v21_v0, 0.0  ;;  %v30_v4 = vmax.f32 %v22_v1, 0.0  ;;  %v24_v6 = vld [vmem:[#allocation2 + $0x18] sm:$0xff]  ;;  %v25_v7 = vld [vmem:[#allocation2 + $0x20] sm:$0xff]  ;;  %s52_s12 = int_to_ptr.vmem [resolvable:$true] %s51_s12 }
   0xf   :  { %v31_v5 = vmax.f32 %v23_v2, 0.0  ;;  %v26_v8 = vld [vmem:[#allocation2 + $0x28] sm:$0xff]  ;;  %v32_v9 = vmax.f32 %v24_v6, 0.0  ;;  %v33_v10 = vmax.f32 %v25_v7, 0.0  ;;  %v27_v12 = vld [vmem:[#allocation2 + $0x30] sm:$0xff]  ;;  %v28_v13 = vld [vmem:[#allocation2 + $0x38] sm:$0xff]  ;;  %p87_p6 = scmp.lt.s32.totalorder %s52_s12, %s52_s12 }
  0x10   :  { %v34_v11 = vmax.f32 %v26_v8, 0.0  ;;  %37 = vst [vmem:[#allocation5] sm:$0xff] %v29_v3  ;;  %38 = vst [vmem:[#allocation5 + $0x8] sm:$0xff] %v30_v4  ;;  %v35_v14 = vmax.f32 %v27_v12, 0.0  ;;  %v36_v15 = vmax.f32 %v28_v13, 0.0  ;;  %s82_s0 = scalar_lea.vmem %s52_s12, 1024 }
  0x11   :  { %39 = vst [vmem:[#allocation5 + $0x10] sm:$0xff] %v31_v5  ;;  %40 = vst [vmem:[#allocation5 + $0x18] sm:$0xff] %v32_v9  ;;  %p83_p5 = scmp.ne.s32.totalorder %s52_s12, %s82_s0  ;;  %p88_p7 = scmp.lt.s32.totalorder %s82_s0, %s82_s0 }
  0x12   :  { %41 = vst [vmem:[#allocation5 + $0x20] sm:$0xff] %v33_v10  ;;  %42 = vst [vmem:[#allocation5 + $0x28] sm:$0xff] %v34_v11 }
  0x13   :  { %43 = vst [vmem:[#allocation5 + $0x30] sm:$0xff] %v35_v14  ;;  %44 = vst [vmem:[#allocation5 + $0x38] sm:$0xff] %v36_v15  ;;  %p89_p8 = por %p88_p7, %p87_p6 }
  0x15   :  { %p90_p9 = pnand %p89_p8, %p83_p5 }
  0x17   :  { %93 = shalt.err (!%p90_p9)
}
  0x18   :  { %54 = dma.vmem_to_hbm [thread:$0]  %s52_s12, 1024, %s125_s1, [#allocation4]  }
  0x19   :  { %104 = dma.done.wait [#allocation4], 1024  }
  0x1a   :  { %105 = vsyncadd [#allocation4], 4294966272 }
  0x1b   :  { %58 = vsyncpa [#allocation3], 1 }
  0x1c   :  { %59 = vsyncpa [#allocation4], 1 }

</bundles_post_ra>
